<compile_context>
chip_gen: v6e
topology: v6e:2x2x1
jax: 0.10.0
libtpu: 0.0.40
codegen_flags: <defaults>
</compile_context>

<pallas_src>
import functools

import jax
import jax.numpy as jnp
from jax.experimental import pallas as pl
from jax.experimental.pallas import tpu as pltpu


def _r8(v):
    """Round up to a multiple of 8 (sublane alignment for packed weight rows)."""
    return ((v + 7) // 8) * 8


# ----------------------------------------------------------------------------
# Pallas kernel (single invocation, whole problem resident in VMEM)
# ----------------------------------------------------------------------------
def _tsmixer_kernel(cfg, x_ref, w_ref, bcol_ref, brow_ref, o_ref):
    B, L, C, D, P, n_layers, seq_norm = cfg
    BC, BD = B * C, B * D
    rD, rL, rBC, rBD = _r8(D), _r8(L), _r8(BC), _r8(BD)
    layer_rows = rD + rL + rBC + rBD

    # Residual stream for the whole batch: [L, B*C], f32.
    x = x_ref[...].astype(jnp.float32)

    means = stdev = seq_last = None
    if seq_norm == 'RevIN':
        means = jnp.mean(x, axis=0, keepdims=True)            # [1, B*C]
        xc = x - means
        var = jnp.mean(xc * xc, axis=0, keepdims=True)        # unbiased=False
        inv_std = jax.lax.rsqrt(var + 1e-5)                   # EUP rsqrt
        stdev = jnp.sqrt(var + 1e-5)                          # tiny [1, B*C]
        x = xc * inv_std
    elif seq_norm == 'Diff':
        seq_last = x[L - 1:L, :]                              # [1, B*C]
        x = x - seq_last

    # e_layers ResBlocks (statically unrolled); each weight slice is loaded once.
    for i in range(n_layers):
        base = i * layer_rows
        wt1T = w_ref[base:base + D, :L]                                    # [D, L]
        wt2T = w_ref[base + rD:base + rD + L, :D]                          # [L, D]
        wc1b = w_ref[base + rD + rL:base + rD + rL + BC, :BD]              # [B*C, B*D]
        wc2b = w_ref[base + rD + rL + rBC:base + rD + rL + rBC + BD, :BC]  # [B*D, B*C]
        bt1 = bcol_ref[:D, 2 * i:2 * i + 1]                                # [D, 1]
        bt2 = bcol_ref[:L, 2 * i + 1:2 * i + 2]                            # [L, 1]
        bc1 = brow_ref[2 * i:2 * i + 1, :BD]                               # [1, B*D]
        bc2 = brow_ref[2 * i + 1:2 * i + 2, :BC]                           # [1, B*C]

        # --- temporal mixing: one matmul for all B*C columns ---
        h = jnp.dot(wt1T, x.astype(jnp.bfloat16),
                    preferred_element_type=jnp.float32) + bt1              # [D, B*C]
        h = jnp.maximum(h, 0.0)
        t = jnp.dot(wt2T, h.astype(jnp.bfloat16),
                    preferred_element_type=jnp.float32) + bt2              # [L, B*C]
        x = x + t                                                          # residual, f32

        # --- channel mixing: block-diagonal weights fuse the batch ---
        h2 = jnp.dot(x.astype(jnp.bfloat16), wc1b,
                     preferred_element_type=jnp.float32) + bc1             # [L, B*D]
        h2 = jnp.maximum(h2, 0.0)
        c = jnp.dot(h2.astype(jnp.bfloat16), wc2b,
                    preferred_element_type=jnp.float32) + bc2              # [L, B*C]
        x = x + c                                                          # residual, f32

    # --- projection along time, one matmul for the whole batch ---
    wp_base = n_layers * layer_rows
    wpT = w_ref[wp_base:wp_base + P, :L]                                   # [P, L]
    bp = bcol_ref[:P, 2 * n_layers:2 * n_layers + 1]                       # [P, 1]
    out = jnp.dot(wpT, x.astype(jnp.bfloat16),
                  preferred_element_type=jnp.float32) + bp                 # [P, B*C]

    if seq_norm == 'RevIN':
        out = out * stdev + means
    elif seq_norm == 'Diff':
        out = out + seq_last

    o_ref[...] = out.astype(o_ref.dtype)    # single store of one output tile


# ----------------------------------------------------------------------------
# One-time parameter preparation (model-load time; NOT in the per-call hot path)
# ----------------------------------------------------------------------------
def prepare_params(params, *, batch_size):
    """Pre-transpose / block-diagonalise / bf16-cast and pack into 3 buffers."""
    wt1, bt1, wt2, bt2, wc1, bc1, wc2, bc2, wp, bp = params
    n, L, D = wt1.shape
    C = wc1.shape[1]
    P = wp.shape[1]
    B = batch_size
    BC, BD = B * C, B * D
    f32, bf16 = jnp.float32, jnp.bfloat16

    # Pre-transposed temporal / projection weights -> results land in [*, B*C].
    wt1T = jnp.swapaxes(wt1, 1, 2)                           # [n, D, L]
    wt2T = jnp.swapaxes(wt2, 1, 2)                           # [n, L, D]
    wpT = wp.T                                               # [P, L]

    # Block-diagonal channel-mixing weights: fuse the batch into one matmul.
    eye = jnp.eye(B, dtype=wc1.dtype)
    wc1bd = jnp.einsum('bq,ncd->nbcqd', eye, wc1).reshape(n, BC, BD)
    wc2bd = jnp.einsum('bq,ndc->nbdqc', eye, wc2).reshape(n, BD, BC)

    # ---- pack all matmul weights (bf16) into one 2-D slab ----
    Wd = max(L, D, BC, BD)
    rD, rL, rBC, rBD = _r8(D), _r8(L), _r8(BC), _r8(BD)

    def pad_block(m, rows):
        r, c = m.shape
        return jnp.pad(m.astype(bf16), ((0, rows - r), (0, Wd - c)))

    blocks = []
    for i in range(n):
        blocks += [pad_block(wt1T[i], rD), pad_block(wt2T[i], rL),
                   pad_block(wc1bd[i], rBC), pad_block(wc2bd[i], rBD)]
    blocks.append(pad_block(wpT, _r8(P)))
    w_packed = jnp.concatenate(blocks, axis=0)               # [total_rows, Wd] bf16

    # ---- column-oriented biases (broadcast along lanes): bt1, bt2, bp ----
    colH = max(D, L, P)
    cols = []
    for i in range(n):
        cols += [jnp.pad(bt1[i].astype(f32), (0, colH - D)),
                 jnp.pad(bt2[i].astype(f32), (0, colH - L))]
    cols.append(jnp.pad(bp.astype(f32), (0, colH - P)))
    bcol_packed = jnp.stack(cols, axis=1)                    # [colH, 2n+1] f32

    # ---- row-oriented biases (broadcast along sublanes), tiled over batch ----
    rowW = max(BD, BC)
    rows = []
    for i in range(n):
        rows += [jnp.pad(jnp.tile(bc1[i], B).astype(f32), (0, rowW - BD)),
                 jnp.pad(jnp.tile(bc2[i], B).astype(f32), (0, rowW - BC))]
    brow_packed = jnp.stack(rows, axis=0)                    # [2n, rowW] f32

    cfg = dict(B=B, L=L, C=C, D=D, P=P, n_layers=n)
    return (jax.device_put(w_packed), jax.device_put(bcol_packed),
            jax.device_put(brow_packed), cfg)


# ----------------------------------------------------------------------------
# Per-call wrapper (hot path: one tiny rearrange in, pallas_call, one out)
# ----------------------------------------------------------------------------
def tsmixer_forward(x_enc, prepared, *, seq_norm, pred_len):
    """x_enc: [B, L, C]  ->  [B, pred_len, C]."""
    w_packed, bcol, brow, cfg = prepared
    B, L, C, D, P, n = (cfg[k] for k in ('B', 'L', 'C', 'D', 'P', 'n_layers'))
    assert x_enc.shape == (B, L, C)
    assert P == pred_len   # projection is Linear(seq_len -> pred_len)

    # Fused-batch layout: [B, L, C] -> [L, B*C]  (column index = b*C + c).
    x_f = jnp.transpose(x_enc, (1, 0, 2)).reshape(L, B * C)

    kernel = functools.partial(_tsmixer_kernel, (B, L, C, D, P, n, seq_norm))
    vmem = pl.BlockSpec(memory_space=pltpu.MemorySpace.VMEM)

    out = pl.pallas_call(
        kernel,
        out_shape=jax.ShapeDtypeStruct((P, B * C), x_enc.dtype),
        in_specs=[vmem] * 4,
        out_specs=vmem,
        # For large B: grid=(cdiv(B, bt),) + dimension_semantics=("parallel",)
        # to occupy both v7x TensorCores; at B=2 per-step overhead dominates.
    )(x_f, w_packed, bcol, brow)

    # [P, B*C] -> [B, P, C]; Model.forward's [:, -pred_len:, :] slice is identity.
    return jnp.transpose(out.reshape(P, B, C), (1, 0, 2))


# ----------------------------------------------------------------------------
# Pure-JAX reference (f32, highest precision)
# ----------------------------------------------------------------------------
def tsmixer_reference(x_enc, params, *, seq_norm, pred_len):
    wt1, bt1, wt2, bt2, wc1, bc1, wc2, bc2, wp, bp = params
    n_layers = wt1.shape[0]
    hp = jax.lax.Precision.HIGHEST
    x = x_enc.astype(jnp.float32)

    if seq_norm == 'RevIN':
        means = jnp.mean(x, axis=1, keepdims=True)
        x = x - means
        stdev = jnp.sqrt(jnp.var(x, axis=1, keepdims=True) + 1e-5)
        x = x / stdev
    elif seq_norm == 'Diff':
        seq_last = x[:, -1:, :]
        x = x - seq_last

    for i in range(n_layers):
        xt = jnp.swapaxes(x, 1, 2)                                  # [B, C, L]
        h = jax.nn.relu(jnp.einsum('bcl,ld->bcd', xt, wt1[i], precision=hp) + bt1[i])
        t = jnp.einsum('bcd,dl->bcl', h, wt2[i], precision=hp) + bt2[i]
        x = x + jnp.swapaxes(t, 1, 2)
        h2 = jax.nn.relu(jnp.einsum('blc,cd->bld', x, wc1[i], precision=hp) + bc1[i])
        c = jnp.einsum('bld,dc->blc', h2, wc2[i], precision=hp) + bc2[i]
        x = x + c

    out = jnp.einsum('bcl,lp->bcp', jnp.swapaxes(x, 1, 2), wp, precision=hp) + bp
    out = jnp.swapaxes(out, 1, 2)                                   # [B, P, C]

    if seq_norm == 'RevIN':
        out = out * stdev + means
    elif seq_norm == 'Diff':
        out = out + seq_last

    return out[:, -pred_len:, :]


# ----------------------------------------------------------------------------
# Parameter construction (deterministic; Linear weights stored [in, out])
# ----------------------------------------------------------------------------
def init_params(key, *, e_layers, seq_len, enc_in, d_model, pred_len):
    ks = jax.random.split(key, 10)
    s = 0.1
    wt1 = s * jax.random.normal(ks[0], (e_layers, seq_len, d_model), jnp.float32)
    bt1 = s * jax.random.normal(ks[1], (e_layers, d_model), jnp.float32)
    wt2 = s * jax.random.normal(ks[2], (e_layers, d_model, seq_len), jnp.float32)
    bt2 = s * jax.random.normal(ks[3], (e_layers, seq_len), jnp.float32)
    wc1 = s * jax.random.normal(ks[4], (e_layers, enc_in, d_model), jnp.float32)
    bc1 = s * jax.random.normal(ks[5], (e_layers, d_model), jnp.float32)
    wc2 = s * jax.random.normal(ks[6], (e_layers, d_model, enc_in), jnp.float32)
    bc2 = s * jax.random.normal(ks[7], (e_layers, enc_in), jnp.float32)
    wp = s * jax.random.normal(ks[8], (seq_len, pred_len), jnp.float32)
    bp = s * jax.random.normal(ks[9], (pred_len,), jnp.float32)
    return (wt1, bt1, wt2, bt2, wc1, bc1, wc2, bc2, wp, bp)


# ----------------------------------------------------------------------------
if __name__ == "__main__":
    # configs: task_name='long_term_forecast', seq_len=16, pred_len=8,
    #          enc_in=c_out=8, d_model=32, e_layers=2, dropout=0.0 (eval),
    #          seq_norm='RevIN'
    B, L, C, D, P, N = 2, 16, 8, 32, 8, 2
    SEQ_NORM = 'RevIN'

    key = jax.random.PRNGKey(0)
    k_x, k_p = jax.random.split(key)
    x_enc = jax.random.normal(k_x, (B, L, C), jnp.float32)
    # x_mark_enc / x_dec / x_mark_dec are unused by the forecast path.
    params = init_params(k_p, e_layers=N, seq_len=L, enc_in=C, d_model=D, pred_len=P)

    # One-time prep (model-load time); the jitted forward closes over the result
    # so the packed weights constant-fold out of the per-call hot path.
    prepared = prepare_params(params, batch_size=B)
    fwd = jax.jit(lambda xe: tsmixer_forward(xe, prepared,
                                             seq_norm=SEQ_NORM, pred_len=P))

    out = jax.block_until_ready(fwd(x_enc))

    ref = tsmixer_reference(x_enc, params, seq_norm=SEQ_NORM, pred_len=P)
    assert out.shape == (B, P, C), out.shape
    # bf16 MXU inputs (f32 accumulate) -> slightly looser tolerance than pure f32.
    assert jnp.allclose(out, ref, atol=2e-2, rtol=2e-2), \
        f"max abs err = {jnp.max(jnp.abs(out - ref))}"

    print("KERNEL_OK")
</pallas_src>

<mosaic_0001>
module attributes {stable_mosaic.version = 11 : i64} {
  func.func @_tsmixer_kernel(%arg0: memref<16x16xf32, #tpu.memory_space<vmem>>, %arg1: memref<264x64xbf16, #tpu.memory_space<vmem>>, %arg2: memref<32x5xf32, #tpu.memory_space<vmem>>, %arg3: memref<4x64xf32, #tpu.memory_space<vmem>>, %arg4: memref<8x16xf32, #tpu.memory_space<vmem>>) attributes {dimension_semantics = [], scalar_prefetch = 0 : i64, scratch_operands = 0 : i64, tpu.core_type = #tpu.core_type<tc>} {
    %c0 = arith.constant 0 : index
    %c0_0 = arith.constant 0 : index
    %0 = vector.load %arg0[%c0, %c0_0] : memref<16x16xf32, #tpu.memory_space<vmem>>, vector<16x16xf32>
    %cst = arith.constant dense<0.000000e+00> : vector<16xf32>
    %1 = vector.multi_reduction <add>, %0, %cst [0] : vector<16x16xf32> to vector<16xf32>
    %2 = vector.shape_cast %1 : vector<16xf32> to vector<1x16xf32>
    %cst_1 = arith.constant 1.600000e+01 : f32
    %3 = vector.broadcast %cst_1 : f32 to vector<1x16xf32>
    %4 = arith.divf %2, %3 : vector<1x16xf32>
    %5 = vector.broadcast %4 : vector<1x16xf32> to vector<16x16xf32>
    %6 = arith.subf %0, %5 : vector<16x16xf32>
    %7 = arith.mulf %6, %6 : vector<16x16xf32>
    %cst_2 = arith.constant dense<0.000000e+00> : vector<16xf32>
    %8 = vector.multi_reduction <add>, %7, %cst_2 [0] : vector<16x16xf32> to vector<16xf32>
    %9 = vector.shape_cast %8 : vector<16xf32> to vector<1x16xf32>
    %cst_3 = arith.constant 1.600000e+01 : f32
    %10 = vector.broadcast %cst_3 : f32 to vector<1x16xf32>
    %11 = arith.divf %9, %10 : vector<1x16xf32>
    %cst_4 = arith.constant 9.99999974E-6 : f32
    %12 = vector.broadcast %cst_4 : f32 to vector<1x16xf32>
    %13 = arith.addf %11, %12 : vector<1x16xf32>
    %14 = math.rsqrt %13 : vector<1x16xf32>
    %cst_5 = arith.constant 9.99999974E-6 : f32
    %15 = vector.broadcast %cst_5 : f32 to vector<1x16xf32>
    %16 = arith.addf %11, %15 : vector<1x16xf32>
    %17 = math.sqrt %16 : vector<1x16xf32>
    %18 = vector.broadcast %14 : vector<1x16xf32> to vector<16x16xf32>
    %19 = arith.mulf %6, %18 : vector<16x16xf32>
    %c0_6 = arith.constant 0 : index
    %c0_7 = arith.constant 0 : index
    %20 = vector.load %arg1[%c0_6, %c0_7] : memref<264x64xbf16, #tpu.memory_space<vmem>>, vector<32x16xbf16>
    %c32 = arith.constant 32 : index
    %c0_8 = arith.constant 0 : index
    %21 = vector.load %arg1[%c32, %c0_8] : memref<264x64xbf16, #tpu.memory_space<vmem>>, vector<16x32xbf16>
    %c48 = arith.constant 48 : index
    %c0_9 = arith.constant 0 : index
    %22 = vector.load %arg1[%c48, %c0_9] : memref<264x64xbf16, #tpu.memory_space<vmem>>, vector<16x64xbf16>
    %c64 = arith.constant 64 : index
    %c0_10 = arith.constant 0 : index
    %23 = vector.load %arg1[%c64, %c0_10] : memref<264x64xbf16, #tpu.memory_space<vmem>>, vector<64x16xbf16>
    %c0_11 = arith.constant 0 : index
    %c0_12 = arith.constant 0 : index
    %24 = vector.load %arg2[%c0_11, %c0_12] : memref<32x5xf32, #tpu.memory_space<vmem>>, vector<32x1xf32>
    %c0_13 = arith.constant 0 : index
    %c1 = arith.constant 1 : index
    %25 = vector.load %arg2[%c0_13, %c1] : memref<32x5xf32, #tpu.memory_space<vmem>>, vector<16x1xf32>
    %c0_14 = arith.constant 0 : index
    %c0_15 = arith.constant 0 : index
    %26 = vector.load %arg3[%c0_14, %c0_15] : memref<4x64xf32, #tpu.memory_space<vmem>>, vector<1x64xf32>
    %c1_16 = arith.constant 1 : index
    %c0_17 = arith.constant 0 : index
    %27 = vector.load %arg3[%c1_16, %c0_17] : memref<4x64xf32, #tpu.memory_space<vmem>>, vector<1x16xf32>
    %28 = arith.truncf %19 : vector<16x16xf32> to vector<16x16xbf16>
    %cst_18 = arith.constant dense<0.000000e+00> : vector<32x16xf32>
    %29 = tpu.matmul %20, %28, %cst_18 {dimension_numbers = #tpu.dot_dimension_numbers<[1], [0], [0], [1], [0, 0, 1, 1], [], []>} : vector<32x16xbf16>, vector<16x16xbf16>, vector<32x16xf32> -> vector<32x16xf32>
    %30 = vector.broadcast %24 : vector<32x1xf32> to vector<32x16xf32>
    %31 = arith.addf %29, %30 : vector<32x16xf32>
    %cst_19 = arith.constant 0.000000e+00 : f32
    %32 = vector.broadcast %cst_19 : f32 to vector<32x16xf32>
    %33 = arith.maximumf %31, %32 : vector<32x16xf32>
    %34 = arith.truncf %33 : vector<32x16xf32> to vector<32x16xbf16>
    %cst_20 = arith.constant dense<0.000000e+00> : vector<16x16xf32>
    %35 = tpu.matmul %21, %34, %cst_20 {dimension_numbers = #tpu.dot_dimension_numbers<[1], [0], [0], [1], [0, 0, 1, 1], [], []>} : vector<16x32xbf16>, vector<32x16xbf16>, vector<16x16xf32> -> vector<16x16xf32>
    %36 = vector.broadcast %25 : vector<16x1xf32> to vector<16x16xf32>
    %37 = arith.addf %35, %36 : vector<16x16xf32>
    %38 = arith.addf %19, %37 : vector<16x16xf32>
    %39 = arith.truncf %38 : vector<16x16xf32> to vector<16x16xbf16>
    %cst_21 = arith.constant dense<0.000000e+00> : vector<16x64xf32>
    %40 = tpu.matmul %39, %22, %cst_21 {dimension_numbers = #tpu.dot_dimension_numbers<[1], [0], [0], [1], [0, 0, 1, 1], [], []>} : vector<16x16xbf16>, vector<16x64xbf16>, vector<16x64xf32> -> vector<16x64xf32>
    %41 = vector.broadcast %26 : vector<1x64xf32> to vector<16x64xf32>
    %42 = arith.addf %40, %41 : vector<16x64xf32>
    %cst_22 = arith.constant 0.000000e+00 : f32
    %43 = vector.broadcast %cst_22 : f32 to vector<16x64xf32>
    %44 = arith.maximumf %42, %43 : vector<16x64xf32>
    %45 = arith.truncf %44 : vector<16x64xf32> to vector<16x64xbf16>
    %cst_23 = arith.constant dense<0.000000e+00> : vector<16x16xf32>
    %46 = tpu.matmul %45, %23, %cst_23 {dimension_numbers = #tpu.dot_dimension_numbers<[1], [0], [0], [1], [0, 0, 1, 1], [], []>} : vector<16x64xbf16>, vector<64x16xbf16>, vector<16x16xf32> -> vector<16x16xf32>
    %47 = vector.broadcast %27 : vector<1x16xf32> to vector<16x16xf32>
    %48 = arith.addf %46, %47 : vector<16x16xf32>
    %49 = arith.addf %38, %48 : vector<16x16xf32>
    %c128 = arith.constant 128 : index
    %c0_24 = arith.constant 0 : index
    %50 = vector.load %arg1[%c128, %c0_24] : memref<264x64xbf16, #tpu.memory_space<vmem>>, vector<32x16xbf16>
    %c160 = arith.constant 160 : index
    %c0_25 = arith.constant 0 : index
    %51 = vector.load %arg1[%c160, %c0_25] : memref<264x64xbf16, #tpu.memory_space<vmem>>, vector<16x32xbf16>
    %c176 = arith.constant 176 : index
    %c0_26 = arith.constant 0 : index
    %52 = vector.load %arg1[%c176, %c0_26] : memref<264x64xbf16, #tpu.memory_space<vmem>>, vector<16x64xbf16>
    %c192 = arith.constant 192 : index
    %c0_27 = arith.constant 0 : index
    %53 = vector.load %arg1[%c192, %c0_27] : memref<264x64xbf16, #tpu.memory_space<vmem>>, vector<64x16xbf16>
    %c0_28 = arith.constant 0 : index
    %c2 = arith.constant 2 : index
    %54 = vector.load %arg2[%c0_28, %c2] : memref<32x5xf32, #tpu.memory_space<vmem>>, vector<32x1xf32>
    %c0_29 = arith.constant 0 : index
    %c3 = arith.constant 3 : index
    %55 = vector.load %arg2[%c0_29, %c3] : memref<32x5xf32, #tpu.memory_space<vmem>>, vector<16x1xf32>
    %c2_30 = arith.constant 2 : index
    %c0_31 = arith.constant 0 : index
    %56 = vector.load %arg3[%c2_30, %c0_31] : memref<4x64xf32, #tpu.memory_space<vmem>>, vector<1x64xf32>
    %c3_32 = arith.constant 3 : index
    %c0_33 = arith.constant 0 : index
    %57 = vector.load %arg3[%c3_32, %c0_33] : memref<4x64xf32, #tpu.memory_space<vmem>>, vector<1x16xf32>
    %58 = arith.truncf %49 : vector<16x16xf32> to vector<16x16xbf16>
    %cst_34 = arith.constant dense<0.000000e+00> : vector<32x16xf32>
    %59 = tpu.matmul %50, %58, %cst_34 {dimension_numbers = #tpu.dot_dimension_numbers<[1], [0], [0], [1], [0, 0, 1, 1], [], []>} : vector<32x16xbf16>, vector<16x16xbf16>, vector<32x16xf32> -> vector<32x16xf32>
    %60 = vector.broadcast %54 : vector<32x1xf32> to vector<32x16xf32>
    %61 = arith.addf %59, %60 : vector<32x16xf32>
    %cst_35 = arith.constant 0.000000e+00 : f32
    %62 = vector.broadcast %cst_35 : f32 to vector<32x16xf32>
    %63 = arith.maximumf %61, %62 : vector<32x16xf32>
    %64 = arith.truncf %63 : vector<32x16xf32> to vector<32x16xbf16>
    %cst_36 = arith.constant dense<0.000000e+00> : vector<16x16xf32>
    %65 = tpu.matmul %51, %64, %cst_36 {dimension_numbers = #tpu.dot_dimension_numbers<[1], [0], [0], [1], [0, 0, 1, 1], [], []>} : vector<16x32xbf16>, vector<32x16xbf16>, vector<16x16xf32> -> vector<16x16xf32>
    %66 = vector.broadcast %55 : vector<16x1xf32> to vector<16x16xf32>
    %67 = arith.addf %65, %66 : vector<16x16xf32>
    %68 = arith.addf %49, %67 : vector<16x16xf32>
    %69 = arith.truncf %68 : vector<16x16xf32> to vector<16x16xbf16>
    %cst_37 = arith.constant dense<0.000000e+00> : vector<16x64xf32>
    %70 = tpu.matmul %69, %52, %cst_37 {dimension_numbers = #tpu.dot_dimension_numbers<[1], [0], [0], [1], [0, 0, 1, 1], [], []>} : vector<16x16xbf16>, vector<16x64xbf16>, vector<16x64xf32> -> vector<16x64xf32>
    %71 = vector.broadcast %56 : vector<1x64xf32> to vector<16x64xf32>
    %72 = arith.addf %70, %71 : vector<16x64xf32>
    %cst_38 = arith.constant 0.000000e+00 : f32
    %73 = vector.broadcast %cst_38 : f32 to vector<16x64xf32>
    %74 = arith.maximumf %72, %73 : vector<16x64xf32>
    %75 = arith.truncf %74 : vector<16x64xf32> to vector<16x64xbf16>
    %cst_39 = arith.constant dense<0.000000e+00> : vector<16x16xf32>
    %76 = tpu.matmul %75, %53, %cst_39 {dimension_numbers = #tpu.dot_dimension_numbers<[1], [0], [0], [1], [0, 0, 1, 1], [], []>} : vector<16x64xbf16>, vector<64x16xbf16>, vector<16x16xf32> -> vector<16x16xf32>
    %77 = vector.broadcast %57 : vector<1x16xf32> to vector<16x16xf32>
    %78 = arith.addf %76, %77 : vector<16x16xf32>
    %79 = arith.addf %68, %78 : vector<16x16xf32>
    %c256 = arith.constant 256 : index
    %c0_40 = arith.constant 0 : index
    %80 = vector.load %arg1[%c256, %c0_40] : memref<264x64xbf16, #tpu.memory_space<vmem>>, vector<8x16xbf16>
    %c0_41 = arith.constant 0 : index
    %c4 = arith.constant 4 : index
    %81 = vector.load %arg2[%c0_41, %c4] : memref<32x5xf32, #tpu.memory_space<vmem>>, vector<8x1xf32>
    %82 = arith.truncf %79 : vector<16x16xf32> to vector<16x16xbf16>
    %cst_42 = arith.constant dense<0.000000e+00> : vector<8x16xf32>
    %83 = tpu.matmul %80, %82, %cst_42 {dimension_numbers = #tpu.dot_dimension_numbers<[1], [0], [0], [1], [0, 0, 1, 1], [], []>} : vector<8x16xbf16>, vector<16x16xbf16>, vector<8x16xf32> -> vector<8x16xf32>
    %84 = vector.broadcast %81 : vector<8x1xf32> to vector<8x16xf32>
    %85 = arith.addf %83, %84 : vector<8x16xf32>
    %86 = vector.broadcast %17 : vector<1x16xf32> to vector<8x16xf32>
    %87 = arith.mulf %85, %86 : vector<8x16xf32>
    %88 = vector.broadcast %4 : vector<1x16xf32> to vector<8x16xf32>
    %89 = arith.addf %87, %88 : vector<8x16xf32>
    %c0_43 = arith.constant 0 : index
    %c0_44 = arith.constant 0 : index
    %90 = vector.load %arg4[%c0_43, %c0_44] : memref<8x16xf32, #tpu.memory_space<vmem>>, vector<8x16xf32>
    tpu.vector_store %arg4[%c0_43, %c0_44], %89 {strides = array<i32>} : memref<8x16xf32, #tpu.memory_space<vmem>>, vector<8x16xf32>,
    return
  }
}

</mosaic_0001>

<bundles_post_ra>
// kernel: _lambda_.1
= control target key start
LH: loop header
LB: loop body
LE: loop exit
PB: predicated region body
PF: predicated region fallthrough
CT: control target
= control target key end

     0   :  { %9 = vsyncpa [#allocation3], 0  ;;  %s923_s15 = smov [#allocation2]   ;;  %s1078_s0 = inlined_call_operand.vmem [shape: f32[16,16], index: 0, kind: input, shape index: {}]   ;;  %s1079_s1 = inlined_call_operand.hbm [shape: bf16[264,64], index: 1, kind: input, shape index: {}]   ;;  %s1080_s2 = inlined_call_operand.vmem [shape: f32[32,5], index: 2, kind: input, shape index: {}]   ;;  %s1081_s3 = inlined_call_operand.vmem [shape: f32[4,64], index: 3, kind: input, shape index: {}]   ;;  %s1082_s4 = inlined_call_operand.vmem [shape: f32[8,16], index: 4, kind: output, shape index: {}]  }
   0x1   :  { %s17_s16 = sshll.u32 %s923_s15, 4  ;;  %s18_s16 = int_to_ptr.vmem [resolvable:$true] %s17_s16 }
   0x2   :  { %s909_s17 = scalar_lea.vmem %s18_s16, 2112  ;;  %p914_p1 = scmp.lt.s32.totalorder %s18_s16, %s18_s16 }
   0x3   :  { %p910_p0 = scmp.ne.s32.totalorder %s18_s16, %s909_s17  ;;  %p915_p2 = scmp.lt.s32.totalorder %s909_s17, %s909_s17 }
   0x5   :  { %p916_p3 = por %p915_p2, %p914_p1 }
   0x7   :  { %p917_p4 = pnand %p916_p3, %p910_p0 }
   0x9   :  { %920 = shalt.err (!%p917_p4)
}
   0xa   :  { %s924_s18 = smov 64   ;;  %s925_s19 = smov 4  }
   0xb   :  { %23 = dma.hbm_to_vmem [thread:$0]  %s1079_s1, 2112, %s18_s16, [#allocation3], %s924_s18, %s924_s18, %s925_s19  }
   0xc   :  { %921 = dma.done.wait [#allocation3], 2112  }
   0xd   :  { %922 = vsyncadd [#allocation3], 4294965184  ;;  %v926_v0 = vmov 0   ;;  %vm34_vm0 = vcmask 130048   ;;  %v32_v1 = vld [vmem:[%s1078_s0] sm:$0xff]  ;;  %v33_v2 = vld [vmem:[%s1078_s0 + $0x8] sm:$0xff] }
   0xe   :  { %873 = vset.pattern.permute.xlu0 %v926_v0  ;;  %874 = vset.pattern.permute.xlu1 %v926_v0  ;;  %v35_v3 = vsel %vm34_vm0, %v32_v1, 0.0  ;;  %v36_v4 = vsel %vm34_vm0, %v33_v2, 0.0  ;;  %v883_v5 = vld [vmem:[#allocation2] sm:$0xff]   ;;  %v972_v7 = vld [vmem:[%s1080_s2 + $0x10] sm:$0xff]  ;;  %v979_v8 = vld [vmem:[%s1080_s2 + $0x18] sm:$0xff]  ;;  %v927_v38 = vmov 0.0  }
   0xf   :  { %v37_v6 = vadd.f32 %v36_v4, %v35_v3  ;;  %795 = vmatprep.mubr.msk.bf16.mxu0 %vm34_vm0, %v883_v5  ;;  %106 = vperm.xlu0 %873, %v972_v7   ;;  %v984_v9 = vld [vmem:[%s1080_s2] sm:$0xff]  ;;  %v990_v11 = vld [vmem:[%s1080_s2 + $0x8] sm:$0xff]  ;;  %vm928_vm1 = vmmov 0   ;;  %v929_v39 = vmov 1   ;;  %v885_v58 = vld [vmem:[#allocation2 + $0x10] sm:$0xff]   ;;  %vm198_vm2 = vcmask 261120  }
  0x10   :  { %96 = vperm.xlu1 %874, %v984_v9   ;;  %v884_v37 = vld [vmem:[#allocation2 + $0x8] sm:$0xff]   ;;  %799 = vmatprep.subr.bf16.mxu1 %v927_v38  ;;  %v886_v59 = vld [vmem:[#allocation2 + $0x18] sm:$0xff]   ;;  %vm331_vm3 = vcmask 523264  }
  0x11   :  { %v38_v10 = vrot.slane %v37_v6, 4  ;;  %803 = vmatprep.mubr.msk.bf16.mxu1 %vm928_vm1, %v927_v38  ;;  %v887_v60 = vld [vmem:[#allocation2 + $0x38] sm:$0xff]  }
  0x13   :  { %v39_v12 = vadd.f32 %v38_v10, %v37_v6  ;;  %111 = vperm.xlu0 %873, %v979_v8  }
  0x14   :  { %101 = vperm.xlu1 %874, %v990_v11  }
  0x15   :  { %v40_v13 = vrot.slane %v39_v12, 2 }
  0x17   :  { %v41_v14 = vadd.f32 %v40_v13, %v39_v12  ;;  %875 = vset.pattern.permute.xlu0 %v929_v39  ;;  %v888_v12 = vld [vmem:[#allocation2 + $0x30] sm:$0xff]   ;;  %v889_v13 = vld [vmem:[#allocation2 + $0x28] sm:$0xff]  }
  0x18   :  { %876 = vset.pattern.permute.xlu1 %v929_v39  ;;  %186 = vperm.xlu0 %875, %v984_v9  }
  0x19   :  { %v42_v15 = vrot.slane %v41_v14, 1  ;;  %190 = vperm.xlu1 %876, %v990_v11  }
  0x1b   :  { %v43_v16 = vadd.f32 %v42_v15, %v41_v14  ;;  %v890_v14 = vld [vmem:[#allocation2 + $0x20] sm:$0xff]  }
  0x1c   :  { %v740_v15 = vld [vmem:[%s1081_s3] ss:$0 sm:$0xff] }
  0x1d   :  { %v994_v17 = vmul.f32 0.0625, %v43_v16 }
  0x1f   :  { %v46_v18 = vsub.f32 %v32_v1, %v994_v17  ;;  %v47_v19 = vsub.f32 %v33_v2, %v994_v17 }
  0x21   :  { %v48_v20 = vmul.f32 %v46_v18, %v46_v18  ;;  %v49_v21 = vmul.f32 %v47_v19, %v47_v19 }
  0x23   :  { %v50_v22 = vsel %vm34_vm0, %v48_v20, 0.0  ;;  %v51_v23 = vsel %vm34_vm0, %v49_v21, 0.0 }
  0x24   :  { %v52_v24 = vadd.f32 %v51_v23, %v50_v22 }
  0x26   :  { %v53_v25 = vrot.slane %v52_v24, 4 }
  0x28   :  { %v54_v26 = vadd.f32 %v53_v25, %v52_v24 }
  0x2a   :  { %v55_v27 = vrot.slane %v54_v26, 2 }
  0x2c   :  { %v56_v28 = vadd.f32 %v55_v27, %v54_v26  ;;  %v891_v26 = vld [vmem:[#allocation2 + $0x40] sm:$0xff]   ;;  %v930_v27 = vmov 2  }
  0x2d   :  { %877 = vset.pattern.permute.xlu1 %v930_v27  ;;  %878 = vset.pattern.permute.xlu0 %v930_v27 }
  0x2e   :  { %v57_v29 = vrot.slane %v56_v28, 1  ;;  %406 = vperm.xlu1 %877, %v972_v7   ;;  %410 = vperm.xlu0 %878, %v979_v8   ;;  %v892_v7 = vld [vmem:[#allocation2 + $0x48] sm:$0xff]   ;;  %v931_v8 = vmov 3  }
  0x30   :  { %v58_v30 = vadd.f32 %v57_v29, %v56_v28  ;;  %v743_v28 = vld [vmem:[%s1081_s3 + $0x1] ss:$0 sm:$0xff] }
  0x32   :  { %v59_v31 = vmul.f32 0.0625, %v58_v30  ;;  %398 = vperm.xlu1 %877, %v984_v9   ;;  %879 = vset.pattern.permute.xlu0 %v931_v8 }
  0x33   :  { %485 = vperm.xlu0 %879, %v984_v9  }
  0x34   :  { %v1000_v32 = vadd.f32 1e-05, %v59_v31 }
  0x36   :  { %899 = vrsqrt.f32 %v1000_v32  ;;  %402 = vperm.xlu1 %877, %v990_v11   ;;  %vm64_vm4 = vcmp.eq.f32.partialorder %v1000_v32, inf  ;;  %vm66_vm5 = vcmp.eq.f32.partialorder %v1000_v32, 0.0 }
  0x3a   :  { %880 = vset.pattern.permute.xlu1 %v931_v8 }
  0x3b   :  { %489 = vperm.xlu1 %880, %v990_v11  }
  0x43   :  { %v1003_v33 = vpop.eup %899 }
  0x44   :  { %v69_v34 = vmul.f32 %v1003_v33, %v46_v18  ;;  %v70_v35 = vmul.f32 %v1003_v33, %v47_v19 }
  0x46   :  { %v93_v36 = vpack.c.bf16 %v70_v35, %v69_v34 }
  0x48   :  { %793 = vmatprep.subr.bf16.mxu0 %v93_v36 }
  0x49   :  { %794 = vmatpush3.bf16.msra.mxu0 %v93_v36 }
  0x4a   :  { %807 = vmatprep.subr.bf16.mxu0 %v927_v38 }
  0x4c   :  { %796 = vmatmul.mubr.msk.bf16.vlgmr.msra.gmra.mxu0 %vm34_vm0, %v884_v37 }
  0x4d   :  { %809 = vmatprep.mubr.msk.bf16.mxu0 %vm928_vm1, %v927_v38  ;;  %808 = vmatpush3.bf16.msra.mxu0 %v886_v59  ;;  %v894_v59 = vld [vmem:[#allocation2 + $0x58] sm:$0xff]  }
  0x8a   :  { %v107_v40 = vpop.permute.xlu0 %106 }
  0x8b   :  { %v97_v41 = vpop.permute.xlu1 %96 }
  0x8e   :  { %v112_v45 = vpop.permute.xlu0 %111 }
  0x8f   :  { %v102_v48 = vpop.permute.xlu1 %101 }
  0x93   :  { %v187_v61 = vpop.permute.xlu0 %186 }
  0x94   :  { %v191_v0 = vpop.permute.xlu1 %190 }
 0x10c   :  { %v797_v42 = vpop.f32.mrf.mxu0 }
 0x10d   :  { %v173_v44 = vadd.f32 %v797_v42, %v107_v40 }
 0x10e   :  { %v164_v43 = vpop.f32.mrf.mxu0 }
 0x10f   :  { %v181_v50 = vmax.f32 %v173_v44, 0.0  ;;  %v165_v51 = vadd.f32 %v164_v43, %v97_v41  ;;  %v407_v41 = vpop.permute.xlu1 %406 }
 0x110   :  { %v798_v46 = vpop.f32.mrf.mxu0 }
 0x111   :  { %v176_v47 = vadd.f32 %v798_v46, %v112_v45  ;;  %v179_v56 = vmax.f32 %v165_v51, 0.0  ;;  %v411_v45 = vpop.permute.xlu0 %410 }
 0x112   :  { %v167_v49 = vpop.f32.mrf.mxu0 }
 0x113   :  { %v182_v52 = vmax.f32 %v176_v47, 0.0  ;;  %v168_v53 = vadd.f32 %v167_v49, %v102_v48  ;;  %v399_v42 = vpop.permute.xlu1 %398 }
 0x115   :  { %v180_v54 = vmax.f32 %v168_v53, 0.0  ;;  %v184_v55 = vpack.c.bf16 %v182_v52, %v181_v50 }
 0x117   :  { %800 = vmatpush3.bf16.msra.mxu1 %v184_v55  ;;  %v183_v57 = vpack.c.bf16 %v180_v54, %v179_v56  ;;  %v403_v49 = vpop.permute.xlu1 %402 }
 0x118   :  { %801 = vmatprep.subr.bf16.mxu1 %v927_v38 }
 0x11b   :  { %802 = vmatpush3.bf16.msra.mxu1 %v183_v57 }
 0x11c   :  { %813 = vmatprep.subr.bf16.mxu1 %v927_v38 }
 0x11e   :  { %804 = vmatmul.mubr.msk.bf16.vlgmr.msra.gmra.mxu1 %vm198_vm2, %v885_v58  ;;  %v893_v58 = vld [vmem:[#allocation2 + $0x50] sm:$0xff]  }
 0x11f   :  { %821 = vmatprep.mubr.msk.bf16.mxu1 %vm928_vm1, %v927_v38  ;;  %814 = vmatpush3.bf16.msra.mxu1 %v887_v60  ;;  %v895_v60 = vld [vmem:[#allocation2 + $0x78] sm:$0xff]  }
 0x120   :  { %815 = vmatprep.subr.bf16.mxu1 %v927_v38 }
 0x123   :  { %816 = vmatpush3.bf16.msra.mxu1 %v888_v12  ;;  %v896_v12 = vld [vmem:[#allocation2 + $0x70] sm:$0xff]  }
 0x124   :  { %817 = vmatprep.subr.bf16.mxu1 %v927_v38 }
 0x127   :  { %818 = vmatpush3.bf16.msra.mxu1 %v889_v13  ;;  %v897_v13 = vld [vmem:[#allocation2 + $0x68] sm:$0xff]  }
 0x128   :  { %819 = vmatprep.subr.bf16.mxu1 %v927_v38 }
 0x12b   :  { %820 = vmatpush3.bf16.msra.mxu1 %v890_v14  ;;  %v898_v14 = vld [vmem:[#allocation2 + $0x60] sm:$0xff]  }
 0x12c   :  { %839 = vmatprep.subr.bf16.mxu1 %v927_v38 }
 0x1de   :  { %v236_v62 = vpop.f32.mrf.mxu1 }
 0x1df   :  { %v237_v1 = vadd.f32 %v236_v62, %v187_v61  ;;  %v486_v61 = vpop.permute.xlu0 %485 }
 0x1e0   :  { %v805_v63 = vpop.f32.mrf.mxu1 }
 0x1e1   :  { %v243_v5 = vadd.f32 %v237_v1, %v69_v34 }
 0x1e2   :  { %v239_v2 = vpop.f32.mrf.mxu1 }
 0x1e3   :  { %v240_v3 = vadd.f32 %v239_v2, %v191_v0  ;;  %v490_v0 = vpop.permute.xlu1 %489 }
 0x1e4   :  { %v806_v4 = vpop.f32.mrf.mxu1 }
 0x1e5   :  { %v244_v6 = vadd.f32 %v240_v3, %v70_v35 }
 0x1e7   :  { %v245_v10 = vpack.c.bf16 %v244_v6, %v243_v5 }
 0x1e9   :  { %810 = vmatmul.mubr.msk.bf16.vlgmr.msra.gmra.mxu0 %vm34_vm0, %v245_v10 }
 0x1ea   :  { %827 = vmatprep.mubr.msk.bf16.mxu0 %vm34_vm0, %v891_v26  ;;  %v932_v26 = vmov 4  }
 0x1eb   :  { %881 = vset.pattern.permute.xlu1 %v932_v26  ;;  %882 = vset.pattern.permute.xlu0 %v932_v26 }
 0x1ec   :  { %680 = vperm.xlu1 %881, %v984_v9   ;;  %v63_v9 = vmul.f32 %v1003_v33, %v1000_v32 }
 0x267   :  { %v681_v8 = vpop.permute.xlu1 %680 }
 0x2a9   :  { %v293_v16 = vpop.f32.mrf.mxu0 }
 0x2aa   :  { %v294_v19 = vadd.f32 %v740_v15, %v293_v16 }
 0x2ab   :  { %v811_v18 = vpop.f32.mrf.mxu0 }
 0x2ac   :  { %v300_v23 = vmax.f32 %v294_v19, 0.0 }
 0x2ad   :  { %v296_v20 = vpop.f32.mrf.mxu0 }
 0x2ae   :  { %v297_v21 = vadd.f32 %v740_v15, %v296_v20  ;;  %v755_v15 = vld [vmem:[%s1081_s3 + $0x2] ss:$0 sm:$0xff] }
 0x2af   :  { %v812_v22 = vpop.f32.mrf.mxu0 }
 0x2b0   :  { %v301_v24 = vmax.f32 %v297_v21, 0.0 }
 0x2b2   :  { %v302_v25 = vpack.c.bf16 %v301_v24, %v300_v23 }
 0x2b4   :  { %822 = vmatmul.mubr.msk.bf16.vlgmr.msra.gmra.mxu1 %vm331_vm3, %v302_v25 }
 0x2b5   :  { %841 = vmatprep.mubr.msk.bf16.mxu1 %vm928_vm1, %v927_v38  ;;  %840 = vmatpush3.bf16.msra.mxu1 %v894_v59 }
 0x2b6   :  { %857 = vmatprep.subr.bf16.mxu1 %v927_v38 }
 0x374   :  { %v369_v29 = vpop.f32.mrf.mxu1 }
 0x375   :  { %v370_v31 = vadd.f32 %v743_v28, %v369_v29 }
 0x376   :  { %v823_v30 = vpop.f32.mrf.mxu1 }
 0x377   :  { %v376_v37 = vadd.f32 %v370_v31, %v243_v5 }
 0x378   :  { %v372_v34 = vpop.f32.mrf.mxu1 }
 0x379   :  { %v373_v35 = vadd.f32 %v743_v28, %v372_v34 }
 0x37a   :  { %v824_v36 = vpop.f32.mrf.mxu1 }
 0x37b   :  { %v377_v39 = vadd.f32 %v373_v35, %v244_v6 }
 0x37d   :  { %v396_v40 = vpack.c.bf16 %v377_v39, %v376_v37 }
 0x37f   :  { %825 = vmatprep.subr.bf16.mxu0 %v396_v40 }
 0x380   :  { %826 = vmatpush3.bf16.msra.mxu0 %v396_v40  ;;  %v67_v40 = vand.u32 2147483648, %v1000_v32 }
 0x381   :  { %831 = vmatprep.subr.bf16.mxu0 %v927_v38 }
 0x383   :  { %828 = vmatmul.mubr.msk.bf16.vlgmr.msra.gmra.mxu0 %vm34_vm0, %v892_v7  ;;  %v65_v7 = vsel %vm64_vm4, %v1000_v32, %v63_v9 }
 0x384   :  { %835 = vmatprep.mubr.msk.bf16.mxu0 %vm928_vm1, %v927_v38 }
 0x443   :  { %v829_v43 = vpop.f32.mrf.mxu0 }
 0x444   :  { %v472_v46 = vadd.f32 %v829_v43, %v407_v41 }
 0x445   :  { %v463_v44 = vpop.f32.mrf.mxu0 }
 0x446   :  { %v480_v51 = vmax.f32 %v472_v46, 0.0  ;;  %v464_v52 = vadd.f32 %v463_v44, %v399_v42  ;;  %v68_v42 = vsel %vm66_vm5, %v67_v40, %v65_v7 }
 0x447   :  { %v830_v47 = vpop.f32.mrf.mxu0 }
 0x448   :  { %v475_v48 = vadd.f32 %v830_v47, %v411_v45  ;;  %v478_v57 = vmax.f32 %v464_v52, 0.0 }
 0x449   :  { %v466_v50 = vpop.f32.mrf.mxu0 }
 0x44a   :  { %v481_v53 = vmax.f32 %v475_v48, 0.0  ;;  %v467_v54 = vadd.f32 %v466_v50, %v403_v49 }
 0x44c   :  { %v483_v55 = vpack.c.bf16 %v481_v53, %v480_v51  ;;  %v479_v56 = vmax.f32 %v467_v54, 0.0 }
 0x44e   :  { %832 = vmatpush3.bf16.msra.mxu0 %v483_v55  ;;  %v482_v11 = vpack.c.bf16 %v479_v56, %v478_v57 }
 0x44f   :  { %833 = vmatprep.subr.bf16.mxu0 %v927_v38 }
 0x452   :  { %834 = vmatpush3.bf16.msra.mxu0 %v482_v11 }
 0x453   :  { %845 = vmatprep.subr.bf16.mxu0 %v927_v38 }
 0x455   :  { %836 = vmatmul.mubr.msk.bf16.vlgmr.msra.gmra.mxu0 %vm198_vm2, %v893_v58 }
 0x456   :  { %853 = vmatprep.mubr.msk.bf16.mxu0 %vm928_vm1, %v927_v38  ;;  %846 = vmatpush3.bf16.msra.mxu0 %v895_v60 }
 0x457   :  { %847 = vmatprep.subr.bf16.mxu0 %v927_v38 }
 0x45a   :  { %848 = vmatpush3.bf16.msra.mxu0 %v896_v12 }
 0x45b   :  { %849 = vmatprep.subr.bf16.mxu0 %v927_v38 }
 0x45e   :  { %850 = vmatpush3.bf16.msra.mxu0 %v897_v13 }
 0x45f   :  { %851 = vmatprep.subr.bf16.mxu0 %v927_v38 }
 0x462   :  { %852 = vmatpush3.bf16.msra.mxu0 %v898_v14 }
 0x515   :  { %v534_v62 = vpop.f32.mrf.mxu0 }
 0x516   :  { %v535_v1 = vadd.f32 %v534_v62, %v486_v61 }
 0x517   :  { %v837_v63 = vpop.f32.mrf.mxu0 }
 0x518   :  { %v541_v5 = vadd.f32 %v535_v1, %v376_v37 }
 0x519   :  { %v537_v2 = vpop.f32.mrf.mxu0 }
 0x51a   :  { %v538_v3 = vadd.f32 %v537_v2, %v490_v0 }
 0x51b   :  { %v838_v4 = vpop.f32.mrf.mxu0 }
 0x51c   :  { %v542_v6 = vadd.f32 %v538_v3, %v377_v39  ;;  %v675_v39 = vld [vmem:[#allocation2 + $0x80] sm:$0xf] }
 0x51e   :  { %v543_v10 = vpack.c.bf16 %v542_v6, %v541_v5 }
 0x520   :  { %842 = vmatmul.mubr.msk.bf16.vlgmr.msra.gmra.mxu1 %vm34_vm0, %v543_v10 }
 0x521   :  { %859 = vmatprep.mubr.msk.bf16.mxu1 %vm928_vm1, %v927_v38  ;;  %v758_v38 = vld [vmem:[%s1081_s3 + $0x3] ss:$0 sm:$0xff] }
 0x5e0   :  { %v591_v16 = vpop.f32.mrf.mxu1 }
 0x5e1   :  { %v592_v19 = vadd.f32 %v755_v15, %v591_v16 }
 0x5e2   :  { %v843_v18 = vpop.f32.mrf.mxu1 }
 0x5e3   :  { %v598_v23 = vmax.f32 %v592_v19, 0.0 }
 0x5e4   :  { %v594_v20 = vpop.f32.mrf.mxu1 }
 0x5e5   :  { %v595_v21 = vadd.f32 %v755_v15, %v594_v20 }
 0x5e6   :  { %v844_v22 = vpop.f32.mrf.mxu1 }
 0x5e7   :  { %v599_v24 = vmax.f32 %v595_v21, 0.0 }
 0x5e9   :  { %v600_v25 = vpack.c.bf16 %v599_v24, %v598_v23 }
 0x5eb   :  { %854 = vmatmul.mubr.msk.bf16.vlgmr.msra.gmra.mxu0 %vm331_vm3, %v600_v25 }
 0x6ab   :  { %v666_v27 = vpop.f32.mrf.mxu0 }
 0x6ac   :  { %v667_v29 = vadd.f32 %v758_v38, %v666_v27 }
 0x6ad   :  { %v855_v28 = vpop.f32.mrf.mxu0 }
 0x6ae   :  { %v673_v35 = vadd.f32 %v667_v29, %v541_v5 }
 0x6af   :  { %v669_v30 = vpop.f32.mrf.mxu0 }
 0x6b0   :  { %v670_v31 = vadd.f32 %v758_v38, %v669_v30 }
 0x6b1   :  { %v856_v34 = vpop.f32.mrf.mxu0 }
 0x6b2   :  { %v674_v36 = vadd.f32 %v670_v31, %v542_v6 }
 0x6b4   :  { %v677_v37 = vpack.c.bf16 %v674_v36, %v673_v35 }
 0x6b6   :  { %858 = vmatpush3.bf16.msra.mxu1 %v677_v37 }
 0x6b9   :  { %860 = vmatmul.mubr.msk.bf16.vlgmr.msra.gmra.mxu1 %vm34_vm0, %v675_v39 }
 0x779   :  { %v720_v41 = vpop.f32.mrf.mxu1 }
 0x77a   :  { %v721_v43 = vadd.f32 %v720_v41, %v681_v8 }
 0x77b   :  { %v861_v44 = vpop.f32.mrf.mxu1 }
 0x77c   :  { %v726_v45 = vmul.f32 %v721_v43, %v68_v42 }
 0x77d   :  { %v723_v46 = vpop.f32.mrf.mxu1 }
 0x77e   :  { %v727_v47 = vadd.f32 %v726_v45, %v994_v17 }
 0x77f   :  { %v862_v48 = vpop.f32.mrf.mxu1 }
 0x780   :  { %728 = vst.msk [vmem:[%s1082_s4] sm:$0xff] %vm34_vm0, %v727_v47 }
 0x781   :  { %733 = vsyncpa [#allocation3], 1 }

</bundles_post_ra>
